<compile_context>
chip_gen: v5e
topology: v5e:2x2
jax: 0.10.0
libtpu: 0.0.40
codegen_flags: <defaults>
</compile_context>

<pallas_src>
import functools

import jax
import jax.numpy as jnp
from jax.experimental import pallas as pl
from jax.experimental.pallas import tpu as pltpu

_LANE = 128                       # lane width (last dim alignment)
_SUBLANE = 8                      # sublane width (second-to-last dim alignment)
_MAX_TILE_B = 512                 # max batch tile
_VMEM_BUDGET = 48 * 1024 * 1024   # conservative resident-set budget (v7x = 64 MiB physical)


def _round_up(x: int, m: int) -> int:
    return ((x + m - 1) // m) * m


def _apply_activation(h, name: str):
    """Activation in f32 (VPU/EUP). Padded lanes are harmless: the next layer's
    weight rows for padded input features are zero."""
    if name == "ReLU":
        return jnp.maximum(h, 0.0)
    if name == "LeakyReLU":
        return jnp.where(h > 0, h, 0.01 * h)
    if name == "Sigmoid":
        return jax.nn.sigmoid(h)
    if name == "Tanh":
        return jnp.tanh(h)
    if name == "ELU":
        return jnp.where(h > 0, h, jnp.expm1(h))
    # TODO(synk): Softmax needs masking of padded lanes; arbitrary callables are
    # not representable as a static kernel.  Fall back to ReLU (module default).
    return jnp.maximum(h, 0.0)


def _fused_mlp_kernel(*refs, num_layers: int, compute_dtype, activation: str):
    """refs = (x_ref, w0, b0, w1, b1, ..., w_{L-1}, b_{L-1}, o_ref).

    Entire MLP for one batch tile: activations stay in vregs, only the final
    result tile is written.  Hidden layers: Linear + activation; last: Linear.
    Matmuls take compute_dtype (bf16) inputs with f32 accumulation.
    """
    x_ref = refs[0]
    o_ref = refs[-1]
    h = x_ref[...]                               # compute_dtype
    for i in range(num_layers):
        w = refs[1 + 2 * i][...]                 # (K_p, N_p) compute_dtype
        b = refs[2 + 2 * i][...]                 # (1, N_p) f32, broadcasts over batch
        acc = jnp.dot(h, w, preferred_element_type=jnp.float32) + b
        if i < num_layers - 1:
            acc = _apply_activation(acc, activation)
            h = acc.astype(compute_dtype)        # feed next matmul in bf16
        else:
            h = acc
    o_ref[...] = h.astype(o_ref.dtype)


def pad_params(params, activation: str = "ReLU", compute_dtype=jnp.bfloat16):
    """One-time (init) prep, hoisted out of the per-call path.

    Zero-pads feature dims to lane (128) multiples, casts weights to the MXU
    compute dtype (bf16 by default, biases stay f32).  Zero padding keeps
    padded columns exactly zero through every Linear, so the un-padded slice of
    the output is exact.

    params: list of (w, b) with w (in, out) = PyTorch weight.T, b (1, out).
    Returns (flat_padded_params, meta) where meta holds static metadata.
    """
    in_features = params[0][0].shape[0]
    out_features = params[-1][0].shape[1]
    sizes = [in_features] + [w.shape[1] for w, _ in params]
    sizes_p = tuple(_round_up(s, _LANE) for s in sizes)

    flat = []
    for i, (w, b) in enumerate(params):
        wp = (jnp.zeros((sizes_p[i], sizes_p[i + 1]), compute_dtype)
              .at[: w.shape[0], : w.shape[1]].set(w.astype(compute_dtype)))
        bp = (jnp.zeros((1, sizes_p[i + 1]), jnp.float32)
              .at[:, : b.shape[1]].set(b.astype(jnp.float32)))
        flat += [wp, bp]

    meta = dict(
        num_layers=len(params),
        in_features=in_features,
        out_features=out_features,
        sizes_p=sizes_p,
        compute_dtype=compute_dtype,
        activation=activation,
    )
    return flat, meta


def flexible_neural_net_forward(x, padded_params, *, meta, weight_buffers=1):
    """Forward pass matching the PyTorch nn.Sequential:
    [Linear -> activation] * len(hidden_layers) -> Linear, dropout=0.0.

    x: (B, input_size); padded_params/meta from pad_params().
    weight_buffers: buffer count for grid-invariant weight/bias BlockSpecs
    (1 = single-buffered, None = pipeline default).
    """
    num_layers = meta["num_layers"]
    in_features = meta["in_features"]
    out_features = meta["out_features"]
    sizes_p = meta["sizes_p"]
    compute_dtype = meta["compute_dtype"]
    activation = meta["activation"]

    if x.shape[1] != in_features:
        raise ValueError(
            f"Expected input with {in_features} features, but got {x.shape[1]}.")

    B = x.shape[0]
    c_item = jnp.dtype(compute_dtype).itemsize

    # --- Resident-set model (bytes) for VMEM budgeting -----------------------
    wbuf = weight_buffers if weight_buffers is not None else 2
    param_bytes = sum(int(p.size) * p.dtype.itemsize for p in padded_params)
    weight_resident = param_bytes * wbuf
    max_hidden_p = max(sizes_p)

    def _resident(tb: int) -> int:
        io = 2 * tb * sizes_p[0] * c_item + 2 * tb * sizes_p[-1] * 4   # double-buffered x / out tiles
        act = 2 * tb * max_hidden_p * 4                                # f32 activation staging
        return weight_resident + io + act

    # TODO(synk): if weight_resident alone exceeds _VMEM_BUDGET (very wide layers
    # on v7x), fall back to tiling the widest layer's N dimension instead of
    # fully fusing all weights resident.

    # --- Balanced batch tiling ------------------------------------------------
    num_tiles = pl.cdiv(max(B, 1), _MAX_TILE_B)
    if B > 256:
        num_tiles = max(num_tiles, 2)        # >=2 grid steps: feed both v7x TCs
    tile_b = min(_round_up(pl.cdiv(max(B, 1), num_tiles), _SUBLANE), _MAX_TILE_B)
    while _resident(tile_b) > _VMEM_BUDGET and tile_b > _SUBLANE:
        tile_b = max(_SUBLANE, _round_up(tile_b // 2, _SUBLANE))
    b_pad = _round_up(max(B, 1), tile_b)
    grid = (b_pad // tile_b,)

    # --- Per-call padding of the activation only ------------------------------
    x_p = (jnp.zeros((b_pad, sizes_p[0]), compute_dtype)
           .at[:B, :in_features].set(x.astype(compute_dtype)))

    # --- BlockSpecs: x/out tiled over batch; weights/biases grid-invariant ----
    wmode = pl.Buffered(weight_buffers) if weight_buffers is not None else None
    in_specs = [pl.BlockSpec((tile_b, sizes_p[0]), lambda i: (i, 0))]
    for li in range(num_layers):
        in_specs.append(pl.BlockSpec((sizes_p[li], sizes_p[li + 1]),
                                     lambda i: (0, 0), pipeline_mode=wmode))
        in_specs.append(pl.BlockSpec((1, sizes_p[li + 1]),
                                     lambda i: (0, 0), pipeline_mode=wmode))
    out_specs = pl.BlockSpec((tile_b, sizes_p[-1]), lambda i: (i, 0))

    # --- Cost estimate + VMEM limit -------------------------------------------
    flops = 2 * b_pad * sum(sizes_p[i] * sizes_p[i + 1] for i in range(num_layers))
    transcendentals = 0
    if activation in ("Sigmoid", "Tanh", "ELU"):
        transcendentals = b_pad * sum(sizes_p[1:-1])
    bytes_accessed = int(x_p.size) * c_item + param_bytes + b_pad * sizes_p[-1] * 4
    cost = pl.CostEstimate(flops=flops, transcendentals=transcendentals,
                           bytes_accessed=bytes_accessed)
    vmem_limit = min(max(int(_resident(tile_b) * 1.3), 32 * 1024 * 1024),
                     100 * 1024 * 1024)

    kernel = functools.partial(_fused_mlp_kernel, num_layers=num_layers,
                               compute_dtype=compute_dtype, activation=activation)
    out_p = pl.pallas_call(
        kernel,
        out_shape=jax.ShapeDtypeStruct((b_pad, sizes_p[-1]), jnp.float32),
        grid=grid,
        in_specs=in_specs,
        out_specs=out_specs,
        compiler_params=pltpu.CompilerParams(
            dimension_semantics=("parallel",),      # shard batch tiles over TCs
            vmem_limit_bytes=vmem_limit),
        cost_estimate=cost,
    )(x_p, *padded_params)

    # Slice away batch / feature padding.
    return out_p[:B, :out_features]


def init_params(key, input_size, output_size, hidden_layers):
    """Deterministic init mimicking PyTorch nn.Linear default
    (uniform +-1/sqrt(fan_in)). Weights stored as (in, out) = PyTorch weight.T."""
    sizes = [input_size] + list(hidden_layers) + [output_size]
    params = []
    for i in range(len(sizes) - 1):
        fan_in, fan_out = sizes[i], sizes[i + 1]
        key, kw, kb = jax.random.split(key, 3)
        bound = 1.0 / jnp.sqrt(fan_in)
        w = jax.random.uniform(kw, (fan_in, fan_out), jnp.float32, -bound, bound)
        b = jax.random.uniform(kb, (1, fan_out), jnp.float32, -bound, bound)
        params.append((w, b))
    return params


if __name__ == "__main__":
    # Small shapes consistent with the module's forward: (batch, input_size).
    batch = 2
    input_size = 16
    hidden_layers = [32, 32]
    output_size = 8

    key = jax.random.PRNGKey(0)
    key, kx = jax.random.split(key)
    x = jax.random.normal(kx, (batch, input_size), jnp.float32)
    params = init_params(key, input_size, output_size, hidden_layers)

    # One-time prep (padding/casting hoisted out of the per-call path).
    padded_params, meta = pad_params(params, activation="ReLU")

    def make_fwd(weight_buffers):
        return jax.jit(functools.partial(
            flexible_neural_net_forward, meta=meta, weight_buffers=weight_buffers))

    try:
        out = jax.block_until_ready(make_fwd(1)(x, padded_params))
    except Exception:
        # Fallback if this JAX build rejects single-buffered BlockSpecs: use the
        # default double-buffered pipeline (numerics identical).
        out = jax.block_until_ready(make_fwd(None)(x, padded_params))

    # Reference 1: same numerics as the kernel (bf16 MXU inputs, f32 accumulate).
    ref_c = x.astype(jnp.bfloat16)
    for i, (w, b) in enumerate(params):
        ref_c = jnp.dot(ref_c, w.astype(jnp.bfloat16),
                        preferred_element_type=jnp.float32) + b
        if i < len(params) - 1:
            ref_c = jnp.maximum(ref_c, 0.0).astype(jnp.bfloat16)

    # Reference 2: full-f32 PyTorch-equivalent forward (loose tol: bf16 inputs).
    ref_f32 = x
    for i, (w, b) in enumerate(params):
        ref_f32 = ref_f32 @ w + b
        if i < len(params) - 1:
            ref_f32 = jnp.maximum(ref_f32, 0.0)

    assert out.shape == (batch, output_size)
    assert jnp.allclose(out, ref_c, atol=1e-4, rtol=1e-4), "mismatch vs bf16 reference"
    assert jnp.allclose(out, ref_f32, atol=5e-2, rtol=5e-2), "mismatch vs f32 reference"

    print("KERNEL_OK")
</pallas_src>

<mosaic_0001>
module attributes {stable_mosaic.version = 11 : i64} {
  func.func @_fused_mlp_kernel(%arg0: i32, %arg1: memref<8x128xbf16, #tpu.memory_space<vmem>>, %arg2: memref<128x128xbf16, #tpu.memory_space<vmem>>, %arg3: memref<1x128xf32, #tpu.memory_space<vmem>>, %arg4: memref<128x128xbf16, #tpu.memory_space<vmem>>, %arg5: memref<1x128xf32, #tpu.memory_space<vmem>>, %arg6: memref<128x128xbf16, #tpu.memory_space<vmem>>, %arg7: memref<1x128xf32, #tpu.memory_space<vmem>>, %arg8: memref<8x128xf32, #tpu.memory_space<vmem>>) attributes {dimension_semantics = [#tpu.dimension_semantics<parallel>], iteration_bounds = array<i64: 1>, scalar_prefetch = 0 : i64, scratch_operands = 0 : i64, tpu.core_type = #tpu.core_type<tc>, window_params = [{transform_indices = @transform_0, window_bounds = array<i64: 8, 128>}, {pipeline_mode = #tpu.pipeline_mode<synchronous>, transform_indices = @transform_1, window_bounds = array<i64: 128, 128>}, {pipeline_mode = #tpu.pipeline_mode<synchronous>, transform_indices = @transform_2, window_bounds = array<i64: 1, 128>}, {pipeline_mode = #tpu.pipeline_mode<synchronous>, transform_indices = @transform_3, window_bounds = array<i64: 128, 128>}, {pipeline_mode = #tpu.pipeline_mode<synchronous>, transform_indices = @transform_4, window_bounds = array<i64: 1, 128>}, {pipeline_mode = #tpu.pipeline_mode<synchronous>, transform_indices = @transform_5, window_bounds = array<i64: 128, 128>}, {pipeline_mode = #tpu.pipeline_mode<synchronous>, transform_indices = @transform_6, window_bounds = array<i64: 1, 128>}, {transform_indices = @transform_7, window_bounds = array<i64: 8, 128>}]} {
    %c0 = arith.constant 0 : index
    %c0_0 = arith.constant 0 : index
    %0 = vector.load %arg1[%c0, %c0_0] : memref<8x128xbf16, #tpu.memory_space<vmem>>, vector<8x128xbf16>
    %c0_1 = arith.constant 0 : index
    %c0_2 = arith.constant 0 : index
    %1 = vector.load %arg2[%c0_1, %c0_2] : memref<128x128xbf16, #tpu.memory_space<vmem>>, vector<128x128xbf16>
    %c0_3 = arith.constant 0 : index
    %c0_4 = arith.constant 0 : index
    %2 = vector.load %arg3[%c0_3, %c0_4] : memref<1x128xf32, #tpu.memory_space<vmem>>, vector<1x128xf32>
    %cst = arith.constant dense<0.000000e+00> : vector<8x128xf32>
    %3 = tpu.matmul %0, %1, %cst {dimension_numbers = #tpu.dot_dimension_numbers<[1], [0], [0], [1], [0, 0, 1, 1], [], []>} : vector<8x128xbf16>, vector<128x128xbf16>, vector<8x128xf32> -> vector<8x128xf32>
    %4 = vector.broadcast %2 : vector<1x128xf32> to vector<8x128xf32>
    %5 = arith.addf %3, %4 : vector<8x128xf32>
    %cst_5 = arith.constant 0.000000e+00 : f32
    %6 = vector.broadcast %cst_5 : f32 to vector<8x128xf32>
    %7 = arith.maximumf %5, %6 : vector<8x128xf32>
    %8 = arith.truncf %7 : vector<8x128xf32> to vector<8x128xbf16>
    %c0_6 = arith.constant 0 : index
    %c0_7 = arith.constant 0 : index
    %9 = vector.load %arg4[%c0_6, %c0_7] : memref<128x128xbf16, #tpu.memory_space<vmem>>, vector<128x128xbf16>
    %c0_8 = arith.constant 0 : index
    %c0_9 = arith.constant 0 : index
    %10 = vector.load %arg5[%c0_8, %c0_9] : memref<1x128xf32, #tpu.memory_space<vmem>>, vector<1x128xf32>
    %cst_10 = arith.constant dense<0.000000e+00> : vector<8x128xf32>
    %11 = tpu.matmul %8, %9, %cst_10 {dimension_numbers = #tpu.dot_dimension_numbers<[1], [0], [0], [1], [0, 0, 1, 1], [], []>} : vector<8x128xbf16>, vector<128x128xbf16>, vector<8x128xf32> -> vector<8x128xf32>
    %12 = vector.broadcast %10 : vector<1x128xf32> to vector<8x128xf32>
    %13 = arith.addf %11, %12 : vector<8x128xf32>
    %cst_11 = arith.constant 0.000000e+00 : f32
    %14 = vector.broadcast %cst_11 : f32 to vector<8x128xf32>
    %15 = arith.maximumf %13, %14 : vector<8x128xf32>
    %16 = arith.truncf %15 : vector<8x128xf32> to vector<8x128xbf16>
    %c0_12 = arith.constant 0 : index
    %c0_13 = arith.constant 0 : index
    %17 = vector.load %arg6[%c0_12, %c0_13] : memref<128x128xbf16, #tpu.memory_space<vmem>>, vector<128x128xbf16>
    %c0_14 = arith.constant 0 : index
    %c0_15 = arith.constant 0 : index
    %18 = vector.load %arg7[%c0_14, %c0_15] : memref<1x128xf32, #tpu.memory_space<vmem>>, vector<1x128xf32>
    %cst_16 = arith.constant dense<0.000000e+00> : vector<8x128xf32>
    %19 = tpu.matmul %16, %17, %cst_16 {dimension_numbers = #tpu.dot_dimension_numbers<[1], [0], [0], [1], [0, 0, 1, 1], [], []>} : vector<8x128xbf16>, vector<128x128xbf16>, vector<8x128xf32> -> vector<8x128xf32>
    %20 = vector.broadcast %18 : vector<1x128xf32> to vector<8x128xf32>
    %21 = arith.addf %19, %20 : vector<8x128xf32>
    %c0_17 = arith.constant 0 : index
    %c0_18 = arith.constant 0 : index
    %22 = vector.load %arg8[%c0_17, %c0_18] : memref<8x128xf32, #tpu.memory_space<vmem>>, vector<8x128xf32>
    tpu.vector_store %arg8[%c0_17, %c0_18], %21 {strides = array<i32>} : memref<8x128xf32, #tpu.memory_space<vmem>>, vector<8x128xf32>,
    return
  }
  func.func @transform_0(%arg0: i32) -> (i32, i32) {
    %c0_i32 = arith.constant 0 : i32
    %c0_i32_0 = arith.constant 0 : i32
    return %arg0, %c0_i32 : i32, i32
  }
  func.func @transform_1(%arg0: i32) -> (i32, i32) {
    %c0_i32 = arith.constant 0 : i32
    %c0_i32_0 = arith.constant 0 : i32
    %c0_i32_1 = arith.constant 0 : i32
    return %c0_i32, %c0_i32_0 : i32, i32
  }
  func.func @transform_2(%arg0: i32) -> (i32, i32) {
    %c0_i32 = arith.constant 0 : i32
    %c0_i32_0 = arith.constant 0 : i32
    %c0_i32_1 = arith.constant 0 : i32
    return %c0_i32, %c0_i32_0 : i32, i32
  }
  func.func @transform_3(%arg0: i32) -> (i32, i32) {
    %c0_i32 = arith.constant 0 : i32
    %c0_i32_0 = arith.constant 0 : i32
    %c0_i32_1 = arith.constant 0 : i32
    return %c0_i32, %c0_i32_0 : i32, i32
  }
  func.func @transform_4(%arg0: i32) -> (i32, i32) {
    %c0_i32 = arith.constant 0 : i32
    %c0_i32_0 = arith.constant 0 : i32
    %c0_i32_1 = arith.constant 0 : i32
    return %c0_i32, %c0_i32_0 : i32, i32
  }
  func.func @transform_5(%arg0: i32) -> (i32, i32) {
    %c0_i32 = arith.constant 0 : i32
    %c0_i32_0 = arith.constant 0 : i32
    %c0_i32_1 = arith.constant 0 : i32
    return %c0_i32, %c0_i32_0 : i32, i32
  }
  func.func @transform_6(%arg0: i32) -> (i32, i32) {
    %c0_i32 = arith.constant 0 : i32
    %c0_i32_0 = arith.constant 0 : i32
    %c0_i32_1 = arith.constant 0 : i32
    return %c0_i32, %c0_i32_0 : i32, i32
  }
  func.func @transform_7(%arg0: i32) -> (i32, i32) {
    %c0_i32 = arith.constant 0 : i32
    %c0_i32_0 = arith.constant 0 : i32
    return %arg0, %c0_i32 : i32, i32
  }
}

module attributes {stable_mosaic.version = 11 : i64} {
  func.func @_fused_mlp_kernel(%arg0: i32, %arg1: memref<8x128xbf16, #tpu.memory_space<vmem>>, %arg2: memref<128x128xbf16, #tpu.memory_space<vmem>>, %arg3: memref<1x128xf32, #tpu.memory_space<vmem>>, %arg4: memref<128x128xbf16, #tpu.memory_space<vmem>>, %arg5: memref<1x128xf32, #tpu.memory_space<vmem>>, %arg6: memref<128x128xbf16, #tpu.memory_space<vmem>>, %arg7: memref<1x128xf32, #tpu.memory_space<vmem>>, %arg8: memref<8x128xf32, #tpu.memory_space<vmem>>) attributes {dimension_semantics = [#tpu.dimension_semantics<parallel>], iteration_bounds = array<i64: 1>, scalar_prefetch = 0 : i64, scratch_operands = 0 : i64, tpu.core_type = #tpu.core_type<tc>, window_params = [{transform_indices = @transform_0, window_bounds = array<i64: 8, 128>}, {pipeline_mode = #tpu.pipeline_mode<synchronous>, transform_indices = @transform_1, window_bounds = array<i64: 128, 128>}, {pipeline_mode = #tpu.pipeline_mode<synchronous>, transform_indices = @transform_2, window_bounds = array<i64: 1, 128>}, {pipeline_mode = #tpu.pipeline_mode<synchronous>, transform_indices = @transform_3, window_bounds = array<i64: 128, 128>}, {pipeline_mode = #tpu.pipeline_mode<synchronous>, transform_indices = @transform_4, window_bounds = array<i64: 1, 128>}, {pipeline_mode = #tpu.pipeline_mode<synchronous>, transform_indices = @transform_5, window_bounds = array<i64: 128, 128>}, {pipeline_mode = #tpu.pipeline_mode<synchronous>, transform_indices = @transform_6, window_bounds = array<i64: 1, 128>}, {transform_indices = @transform_7, window_bounds = array<i64: 8, 128>}]} {
    %c0 = arith.constant 0 : index
    %c0_0 = arith.constant 0 : index
    %0 = vector.load %arg1[%c0, %c0_0] : memref<8x128xbf16, #tpu.memory_space<vmem>>, vector<8x128xbf16>
    %c0_1 = arith.constant 0 : index
    %c0_2 = arith.constant 0 : index
    %1 = vector.load %arg2[%c0_1, %c0_2] : memref<128x128xbf16, #tpu.memory_space<vmem>>, vector<128x128xbf16>
    %c0_3 = arith.constant 0 : index
    %c0_4 = arith.constant 0 : index
    %2 = vector.load %arg3[%c0_3, %c0_4] : memref<1x128xf32, #tpu.memory_space<vmem>>, vector<1x128xf32>
    %cst = arith.constant dense<0.000000e+00> : vector<8x128xf32>
    %3 = tpu.matmul %0, %1, %cst {dimension_numbers = #tpu.dot_dimension_numbers<[1], [0], [0], [1], [0, 0, 1, 1], [], []>} : vector<8x128xbf16>, vector<128x128xbf16>, vector<8x128xf32> -> vector<8x128xf32>
    %4 = vector.broadcast %2 : vector<1x128xf32> to vector<8x128xf32>
    %5 = arith.addf %3, %4 : vector<8x128xf32>
    %cst_5 = arith.constant 0.000000e+00 : f32
    %6 = vector.broadcast %cst_5 : f32 to vector<8x128xf32>
    %7 = arith.maximumf %5, %6 : vector<8x128xf32>
    %8 = arith.truncf %7 : vector<8x128xf32> to vector<8x128xbf16>
    %c0_6 = arith.constant 0 : index
    %c0_7 = arith.constant 0 : index
    %9 = vector.load %arg4[%c0_6, %c0_7] : memref<128x128xbf16, #tpu.memory_space<vmem>>, vector<128x128xbf16>
    %c0_8 = arith.constant 0 : index
    %c0_9 = arith.constant 0 : index
    %10 = vector.load %arg5[%c0_8, %c0_9] : memref<1x128xf32, #tpu.memory_space<vmem>>, vector<1x128xf32>
    %cst_10 = arith.constant dense<0.000000e+00> : vector<8x128xf32>
    %11 = tpu.matmul %8, %9, %cst_10 {dimension_numbers = #tpu.dot_dimension_numbers<[1], [0], [0], [1], [0, 0, 1, 1], [], []>} : vector<8x128xbf16>, vector<128x128xbf16>, vector<8x128xf32> -> vector<8x128xf32>
    %12 = vector.broadcast %10 : vector<1x128xf32> to vector<8x128xf32>
    %13 = arith.addf %11, %12 : vector<8x128xf32>
    %cst_11 = arith.constant 0.000000e+00 : f32
    %14 = vector.broadcast %cst_11 : f32 to vector<8x128xf32>
    %15 = arith.maximumf %13, %14 : vector<8x128xf32>
    %16 = arith.truncf %15 : vector<8x128xf32> to vector<8x128xbf16>
    %c0_12 = arith.constant 0 : index
    %c0_13 = arith.constant 0 : index
    %17 = vector.load %arg6[%c0_12, %c0_13] : memref<128x128xbf16, #tpu.memory_space<vmem>>, vector<128x128xbf16>
    %c0_14 = arith.constant 0 : index
    %c0_15 = arith.constant 0 : index
    %18 = vector.load %arg7[%c0_14, %c0_15] : memref<1x128xf32, #tpu.memory_space<vmem>>, vector<1x128xf32>
    %cst_16 = arith.constant dense<0.000000e+00> : vector<8x128xf32>
    %19 = tpu.matmul %16, %17, %cst_16 {dimension_numbers = #tpu.dot_dimension_numbers<[1], [0], [0], [1], [0, 0, 1, 1], [], []>} : vector<8x128xbf16>, vector<128x128xbf16>, vector<8x128xf32> -> vector<8x128xf32>
    %20 = vector.broadcast %18 : vector<1x128xf32> to vector<8x128xf32>
    %21 = arith.addf %19, %20 : vector<8x128xf32>
    %c0_17 = arith.constant 0 : index
    %c0_18 = arith.constant 0 : index
    %22 = vector.load %arg8[%c0_17, %c0_18] : memref<8x128xf32, #tpu.memory_space<vmem>>, vector<8x128xf32>
    tpu.vector_store %arg8[%c0_17, %c0_18], %21 {strides = array<i32>} : memref<8x128xf32, #tpu.memory_space<vmem>>, vector<8x128xf32>,
    return
  }
  func.func @transform_0(%arg0: i32) -> (i32, i32) {
    %c0_i32 = arith.constant 0 : i32
    %c0_i32_0 = arith.constant 0 : i32
    return %arg0, %c0_i32 : i32, i32
  }
  func.func @transform_1(%arg0: i32) -> (i32, i32) {
    %c0_i32 = arith.constant 0 : i32
    %c0_i32_0 = arith.constant 0 : i32
    %c0_i32_1 = arith.constant 0 : i32
    return %c0_i32, %c0_i32_0 : i32, i32
  }
  func.func @transform_2(%arg0: i32) -> (i32, i32) {
    %c0_i32 = arith.constant 0 : i32
    %c0_i32_0 = arith.constant 0 : i32
    %c0_i32_1 = arith.constant 0 : i32
    return %c0_i32, %c0_i32_0 : i32, i32
  }
  func.func @transform_3(%arg0: i32) -> (i32, i32) {
    %c0_i32 = arith.constant 0 : i32
    %c0_i32_0 = arith.constant 0 : i32
    %c0_i32_1 = arith.constant 0 : i32
    return %c0_i32, %c0_i32_0 : i32, i32
  }
  func.func @transform_4(%arg0: i32) -> (i32, i32) {
    %c0_i32 = arith.constant 0 : i32
    %c0_i32_0 = arith.constant 0 : i32
    %c0_i32_1 = arith.constant 0 : i32
    return %c0_i32, %c0_i32_0 : i32, i32
  }
  func.func @transform_5(%arg0: i32) -> (i32, i32) {
    %c0_i32 = arith.constant 0 : i32
    %c0_i32_0 = arith.constant 0 : i32
    %c0_i32_1 = arith.constant 0 : i32
    return %c0_i32, %c0_i32_0 : i32, i32
  }
  func.func @transform_6(%arg0: i32) -> (i32, i32) {
    %c0_i32 = arith.constant 0 : i32
    %c0_i32_0 = arith.constant 0 : i32
    %c0_i32_1 = arith.constant 0 : i32
    return %c0_i32, %c0_i32_0 : i32, i32
  }
  func.func @transform_7(%arg0: i32) -> (i32, i32) {
    %c0_i32 = arith.constant 0 : i32
    %c0_i32_0 = arith.constant 0 : i32
    return %arg0, %c0_i32 : i32, i32
  }
}

</mosaic_0001>

<bundles_post_ra>
// kernel: flexible_neural_net_forward.1
= control target key start
LH: loop header
LB: loop body
LE: loop exit
PB: predicated region body
PF: predicated region fallthrough
CT: control target
= control target key end

     0   :  { %12 = vsyncpa [#allocation3], 0  ;;  %s601_s0 = inlined_call_operand.vmem [shape: bf16[8,128], index: 0, kind: input, shape index: {}]   ;;  %s602_s1 = inlined_call_operand.hbm [shape: bf16[128,128], index: 1, kind: input, shape index: {}]   ;;  %s603_s2 = inlined_call_operand.vmem [shape: f32[1,128], index: 2, kind: input, shape index: {}]   ;;  %s604_s3 = inlined_call_operand.hbm [shape: bf16[128,128], index: 3, kind: input, shape index: {}]   ;;  %s605_s4 = inlined_call_operand.vmem [shape: f32[1,128], index: 4, kind: input, shape index: {}]   ;;  %s606_s5 = inlined_call_operand.hbm [shape: bf16[128,128], index: 5, kind: input, shape index: {}]   ;;  %s607_s6 = inlined_call_operand.vmem [shape: f32[1,128], index: 6, kind: input, shape index: {}]   ;;  %s608_s7 = inlined_call_operand.vmem [shape: f32[8,128], index: 7, kind: output, shape index: {}]  }
   0x1   :  { %13 = vsyncpa [#allocation5], 0  ;;  %s35_s26 = sshll.u32 %s604_s3, 4  ;;  %s532_s27 = smov [#allocation4]   ;;  %s36_s26 = int_to_ptr.hbm [resolvable:$true] %s35_s26 }
   0x2   :  { %s37_s28 = sshll.u32 %s532_s27, 4  ;;  %s20_s8 = sshll.u32 %s602_s1, 4  ;;  %s38_s28 = int_to_ptr.vmem [resolvable:$true] %s37_s28  ;;  %s21_s8 = int_to_ptr.hbm [resolvable:$true] %s20_s8 }
   0x3   :  { %s533_s9 = smov 64   ;;  %s534_s10 = smov 4  }
   0x4   :  { %43 = dma.hbm_to_vmem [thread:$0]  %s36_s26, 1024, %s38_s28, [#allocation5], %s533_s9, %s533_s9, %s534_s10  }
   0x5   :  { %s535_s11 = smov [#allocation2]   ;;  %s50_s15 = sshll.u32 %s606_s5, 4  ;;  %s51_s15 = int_to_ptr.hbm [resolvable:$true] %s50_s15 }
   0x6   :  { %s22_s12 = sshll.u32 %s535_s11, 4  ;;  %s536_s3 = smov [#allocation6]   ;;  %s23_s12 = int_to_ptr.vmem [resolvable:$true] %s22_s12 }
   0x7   :  { %28 = dma.hbm_to_vmem [thread:$0]  %s21_s8, 1024, %s23_s12, [#allocation3], %s533_s9, %s533_s9, %s534_s10  }
   0x8   :  { %s52_s16 = sshll.u32 %s536_s3, 4  ;;  %s53_s16 = int_to_ptr.vmem [resolvable:$true] %s52_s16 }
   0x9   :  { %58 = dma.hbm_to_vmem [thread:$0]  %s51_s15, 1024, %s53_s16, [#allocation5], %s533_s9, %s533_s9, %s534_s10  }
   0xa   :  { %528 = dma.done.wait [#allocation3], 1024  }
   0xb   :  { %529 = vsyncadd [#allocation3], 4294966272 }
   0xc   :  { %530 = dma.done.wait [#allocation5], 2048  }
   0xd   :  { %531 = vsyncadd [#allocation5], 4294965248  ;;  %v431_v0 = vld [vmem:[#allocation2 + $0x38] sm:$0xff]  ;;  %v430_v1 = vld [vmem:[#allocation2 + $0x30] sm:$0xff] }
   0xe   :  { %142 = vmatpush.bf16.msra.mxu0 %v431_v0  ;;  %v439_v2 = vld [vmem:[#allocation4 + $0x38] sm:$0xff]  ;;  %v438_v3 = vld [vmem:[#allocation4 + $0x30] sm:$0xff]  ;;  %v429_v4 = vld [vmem:[#allocation2 + $0x28] sm:$0xff] }
   0xf   :  { %225 = vmatpush.bf16.msra.mxu1 %v439_v2  ;;  %v437_v5 = vld [vmem:[#allocation4 + $0x28] sm:$0xff]  ;;  %v428_v6 = vld [vmem:[#allocation2 + $0x20] sm:$0xff]  ;;  %v427_v8 = vld [vmem:[#allocation2 + $0x18] sm:$0xff] }
  0x10   :  { %v436_v7 = vld [vmem:[#allocation4 + $0x20] sm:$0xff]  ;;  %v435_v9 = vld [vmem:[#allocation4 + $0x18] sm:$0xff]  ;;  %v426_v10 = vld [vmem:[#allocation2 + $0x10] sm:$0xff] }
  0x11   :  { %v434_v11 = vld [vmem:[#allocation4 + $0x10] sm:$0xff]  ;;  %v425_v12 = vld [vmem:[#allocation2 + $0x8] sm:$0xff]  ;;  %v424_v13 = vld [vmem:[#allocation2] sm:$0xff] }
  0x12   :  { %143 = vmatpush.bf16.msra.mxu0 %v430_v1  ;;  %v73_v14 = vld [vmem:[%s601_s0] sm:$0xf]  ;;  %v433_v15 = vld [vmem:[#allocation4 + $0x8] sm:$0xff]  ;;  %v447_v17 = vld [vmem:[#allocation6 + $0x38] sm:$0xff] }
  0x13   :  { %226 = vmatpush.bf16.msra.mxu1 %v438_v3  ;;  %v432_v16 = vld [vmem:[#allocation4] sm:$0xff]  ;;  %308 = vmatpush.bf16.msra.mxu2 %v447_v17  ;;  %v446_v18 = vld [vmem:[#allocation6 + $0x30] sm:$0xff]  ;;  %v445_v19 = vld [vmem:[#allocation6 + $0x28] sm:$0xff] }
  0x14   :  { %v444_v20 = vld [vmem:[#allocation6 + $0x20] sm:$0xff]  ;;  %v443_v21 = vld [vmem:[#allocation6 + $0x18] sm:$0xff]  ;;  %v442_v22 = vld [vmem:[#allocation6 + $0x10] sm:$0xff] }
  0x15   :  { %v453_v23 = vld [vmem:[%s603_s2] ss:$0 sm:$0xff]  ;;  %v441_v29 = vld [vmem:[#allocation6 + $0x8] sm:$0xff] }
  0x16   :  { %144 = vmatpush.bf16.msra.mxu0 %v429_v4  ;;  %v440_v30 = vld [vmem:[#allocation6] sm:$0xff] }
  0x17   :  { %227 = vmatpush.bf16.msra.mxu1 %v437_v5  ;;  %309 = vmatpush.bf16.msra.mxu2 %v446_v18  ;;  %v454_v31 = vld [vmem:[%s605_s4] ss:$0 sm:$0xff] }
  0x18   :  { %v455_v37 = vld [vmem:[%s607_s6] ss:$0 sm:$0xff] }
  0x1a   :  { %145 = vmatpush.bf16.msra.mxu0 %v428_v6 }
  0x1b   :  { %228 = vmatpush.bf16.msra.mxu1 %v436_v7  ;;  %310 = vmatpush.bf16.msra.mxu2 %v445_v19 }
  0x1e   :  { %146 = vmatpush.bf16.msra.mxu0 %v427_v8 }
  0x1f   :  { %229 = vmatpush.bf16.msra.mxu1 %v435_v9  ;;  %311 = vmatpush.bf16.msra.mxu2 %v444_v20 }
  0x22   :  { %147 = vmatpush.bf16.msra.mxu0 %v426_v10 }
  0x23   :  { %230 = vmatpush.bf16.msra.mxu1 %v434_v11  ;;  %312 = vmatpush.bf16.msra.mxu2 %v443_v21 }
  0x26   :  { %148 = vmatpush.bf16.msra.mxu0 %v425_v12 }
  0x27   :  { %231 = vmatpush.bf16.msra.mxu1 %v433_v15  ;;  %313 = vmatpush.bf16.msra.mxu2 %v442_v22 }
  0x2a   :  { %149 = vmatpush.bf16.msra.mxu0 %v424_v13 }
  0x2b   :  { %232 = vmatpush.bf16.msra.mxu1 %v432_v16  ;;  %314 = vmatpush.bf16.msra.mxu2 %v441_v29 }
  0x2d   :  { %150 = vmatmul.bf16.vlgmr.msra.gmra.mxu0 %v73_v14 }
  0x2f   :  { %315 = vmatpush.bf16.msra.mxu2 %v440_v30 }
  0xaa   :  { %v151_v24 = vpop.f32.mrf.mxu0 }
  0xab   :  { %v152_v25 = vadd.f32 %v453_v23, %v151_v24 }
  0xad   :  { %v155_v26 = vmax.f32 %v152_v25, 0.0 }
  0xaf   :  { %v156_v27 = vpack.c.bf16 %v155_v26, %v155_v26 }
  0xb1   :  { %233 = vmatmul.bf16.vlgmr.msra.gmra.mxu1 %v156_v27 }
  0xb2   :  { %v153_v28 = vpop.f32.mrf.mxu0 }
 0x12e   :  { %v234_v32 = vpop.f32.mrf.mxu1 }
 0x12f   :  { %v235_v33 = vadd.f32 %v454_v31, %v234_v32 }
 0x131   :  { %v238_v34 = vmax.f32 %v235_v33, 0.0 }
 0x133   :  { %v239_v35 = vpack.c.bf16 %v238_v34, %v238_v34 }
 0x135   :  { %316 = vmatmul.bf16.vlgmr.msra.gmra.mxu2 %v239_v35 }
 0x136   :  { %v236_v36 = vpop.f32.mrf.mxu1 }
 0x1b8   :  { %v317_v38 = vpop.f32.mrf.mxu2 }
 0x1b9   :  { %v318_v39 = vadd.f32 %v455_v37, %v317_v38 }
 0x1bb   :  { %321 = vst [vmem:[%s608_s7] sm:$0xff] %v318_v39 }
 0x1c0   :  { %v319_v40 = vpop.f32.mrf.mxu2 }
 0x1c1   :  { %326 = vsyncpa [#allocation3], 1 }
 0x1c2   :  { %327 = vsyncpa [#allocation5], 1 }

// kernel: flexible_neural_net_forward.1
= control target key start
LH: loop header
LB: loop body
LE: loop exit
PB: predicated region body
PF: predicated region fallthrough
CT: control target
= control target key end

     0   :  { %12 = vsyncpa [#allocation3], 0  ;;  %s601_s0 = inlined_call_operand.vmem [shape: bf16[8,128], index: 0, kind: input, shape index: {}]   ;;  %s602_s1 = inlined_call_operand.hbm [shape: bf16[128,128], index: 1, kind: input, shape index: {}]   ;;  %s603_s2 = inlined_call_operand.vmem [shape: f32[1,128], index: 2, kind: input, shape index: {}]   ;;  %s604_s3 = inlined_call_operand.hbm [shape: bf16[128,128], index: 3, kind: input, shape index: {}]   ;;  %s605_s4 = inlined_call_operand.vmem [shape: f32[1,128], index: 4, kind: input, shape index: {}]   ;;  %s606_s5 = inlined_call_operand.hbm [shape: bf16[128,128], index: 5, kind: input, shape index: {}]   ;;  %s607_s6 = inlined_call_operand.vmem [shape: f32[1,128], index: 6, kind: input, shape index: {}]   ;;  %s608_s7 = inlined_call_operand.vmem [shape: f32[8,128], index: 7, kind: output, shape index: {}]  }
   0x1   :  { %13 = vsyncpa [#allocation5], 0  ;;  %s35_s26 = sshll.u32 %s604_s3, 4  ;;  %s532_s27 = smov [#allocation4]   ;;  %s36_s26 = int_to_ptr.hbm [resolvable:$true] %s35_s26 }
   0x2   :  { %s37_s28 = sshll.u32 %s532_s27, 4  ;;  %s20_s8 = sshll.u32 %s602_s1, 4  ;;  %s38_s28 = int_to_ptr.vmem [resolvable:$true] %s37_s28  ;;  %s21_s8 = int_to_ptr.hbm [resolvable:$true] %s20_s8 }
   0x3   :  { %s533_s9 = smov 64   ;;  %s534_s10 = smov 4  }
   0x4   :  { %43 = dma.hbm_to_vmem [thread:$0]  %s36_s26, 1024, %s38_s28, [#allocation5], %s533_s9, %s533_s9, %s534_s10  }
   0x5   :  { %s535_s11 = smov [#allocation2]   ;;  %s50_s15 = sshll.u32 %s606_s5, 4  ;;  %s51_s15 = int_to_ptr.hbm [resolvable:$true] %s50_s15 }
   0x6   :  { %s22_s12 = sshll.u32 %s535_s11, 4  ;;  %s536_s3 = smov [#allocation6]   ;;  %s23_s12 = int_to_ptr.vmem [resolvable:$true] %s22_s12 }
   0x7   :  { %28 = dma.hbm_to_vmem [thread:$0]  %s21_s8, 1024, %s23_s12, [#allocation3], %s533_s9, %s533_s9, %s534_s10  }
   0x8   :  { %s52_s16 = sshll.u32 %s536_s3, 4  ;;  %s53_s16 = int_to_ptr.vmem [resolvable:$true] %s52_s16 }
   0x9   :  { %58 = dma.hbm_to_vmem [thread:$0]  %s51_s15, 1024, %s53_s16, [#allocation5], %s533_s9, %s533_s9, %s534_s10  }
   0xa   :  { %528 = dma.done.wait [#allocation3], 1024  }
   0xb   :  { %529 = vsyncadd [#allocation3], 4294966272 }
   0xc   :  { %530 = dma.done.wait [#allocation5], 2048  }
   0xd   :  { %531 = vsyncadd [#allocation5], 4294965248  ;;  %v431_v0 = vld [vmem:[#allocation2 + $0x38] sm:$0xff]  ;;  %v430_v1 = vld [vmem:[#allocation2 + $0x30] sm:$0xff] }
   0xe   :  { %142 = vmatpush.bf16.msra.mxu0 %v431_v0  ;;  %v439_v2 = vld [vmem:[#allocation4 + $0x38] sm:$0xff]  ;;  %v438_v3 = vld [vmem:[#allocation4 + $0x30] sm:$0xff]  ;;  %v429_v4 = vld [vmem:[#allocation2 + $0x28] sm:$0xff] }
   0xf   :  { %225 = vmatpush.bf16.msra.mxu1 %v439_v2  ;;  %v437_v5 = vld [vmem:[#allocation4 + $0x28] sm:$0xff]  ;;  %v428_v6 = vld [vmem:[#allocation2 + $0x20] sm:$0xff]  ;;  %v427_v8 = vld [vmem:[#allocation2 + $0x18] sm:$0xff] }
  0x10   :  { %v436_v7 = vld [vmem:[#allocation4 + $0x20] sm:$0xff]  ;;  %v435_v9 = vld [vmem:[#allocation4 + $0x18] sm:$0xff]  ;;  %v426_v10 = vld [vmem:[#allocation2 + $0x10] sm:$0xff] }
  0x11   :  { %v434_v11 = vld [vmem:[#allocation4 + $0x10] sm:$0xff]  ;;  %v425_v12 = vld [vmem:[#allocation2 + $0x8] sm:$0xff]  ;;  %v424_v13 = vld [vmem:[#allocation2] sm:$0xff] }
  0x12   :  { %143 = vmatpush.bf16.msra.mxu0 %v430_v1  ;;  %v73_v14 = vld [vmem:[%s601_s0] sm:$0xf]  ;;  %v433_v15 = vld [vmem:[#allocation4 + $0x8] sm:$0xff]  ;;  %v447_v17 = vld [vmem:[#allocation6 + $0x38] sm:$0xff] }
  0x13   :  { %226 = vmatpush.bf16.msra.mxu1 %v438_v3  ;;  %v432_v16 = vld [vmem:[#allocation4] sm:$0xff]  ;;  %308 = vmatpush.bf16.msra.mxu2 %v447_v17  ;;  %v446_v18 = vld [vmem:[#allocation6 + $0x30] sm:$0xff]  ;;  %v445_v19 = vld [vmem:[#allocation6 + $0x28] sm:$0xff] }
  0x14   :  { %v444_v20 = vld [vmem:[#allocation6 + $0x20] sm:$0xff]  ;;  %v443_v21 = vld [vmem:[#allocation6 + $0x18] sm:$0xff]  ;;  %v442_v22 = vld [vmem:[#allocation6 + $0x10] sm:$0xff] }
  0x15   :  { %v453_v23 = vld [vmem:[%s603_s2] ss:$0 sm:$0xff]  ;;  %v441_v29 = vld [vmem:[#allocation6 + $0x8] sm:$0xff] }
  0x16   :  { %144 = vmatpush.bf16.msra.mxu0 %v429_v4  ;;  %v440_v30 = vld [vmem:[#allocation6] sm:$0xff] }
  0x17   :  { %227 = vmatpush.bf16.msra.mxu1 %v437_v5  ;;  %309 = vmatpush.bf16.msra.mxu2 %v446_v18  ;;  %v454_v31 = vld [vmem:[%s605_s4] ss:$0 sm:$0xff] }
  0x18   :  { %v455_v37 = vld [vmem:[%s607_s6] ss:$0 sm:$0xff] }
  0x1a   :  { %145 = vmatpush.bf16.msra.mxu0 %v428_v6 }
  0x1b   :  { %228 = vmatpush.bf16.msra.mxu1 %v436_v7  ;;  %310 = vmatpush.bf16.msra.mxu2 %v445_v19 }
  0x1e   :  { %146 = vmatpush.bf16.msra.mxu0 %v427_v8 }
  0x1f   :  { %229 = vmatpush.bf16.msra.mxu1 %v435_v9  ;;  %311 = vmatpush.bf16.msra.mxu2 %v444_v20 }
  0x22   :  { %147 = vmatpush.bf16.msra.mxu0 %v426_v10 }
  0x23   :  { %230 = vmatpush.bf16.msra.mxu1 %v434_v11  ;;  %312 = vmatpush.bf16.msra.mxu2 %v443_v21 }
  0x26   :  { %148 = vmatpush.bf16.msra.mxu0 %v425_v12 }
  0x27   :  { %231 = vmatpush.bf16.msra.mxu1 %v433_v15  ;;  %313 = vmatpush.bf16.msra.mxu2 %v442_v22 }
  0x2a   :  { %149 = vmatpush.bf16.msra.mxu0 %v424_v13 }
  0x2b   :  { %232 = vmatpush.bf16.msra.mxu1 %v432_v16  ;;  %314 = vmatpush.bf16.msra.mxu2 %v441_v29 }
  0x2d   :  { %150 = vmatmul.bf16.vlgmr.msra.gmra.mxu0 %v73_v14 }
  0x2f   :  { %315 = vmatpush.bf16.msra.mxu2 %v440_v30 }
  0xaa   :  { %v151_v24 = vpop.f32.mrf.mxu0 }
  0xab   :  { %v152_v25 = vadd.f32 %v453_v23, %v151_v24 }
  0xad   :  { %v155_v26 = vmax.f32 %v152_v25, 0.0 }
  0xaf   :  { %v156_v27 = vpack.c.bf16 %v155_v26, %v155_v26 }
  0xb1   :  { %233 = vmatmul.bf16.vlgmr.msra.gmra.mxu1 %v156_v27 }
  0xb2   :  { %v153_v28 = vpop.f32.mrf.mxu0 }
 0x12e   :  { %v234_v32 = vpop.f32.mrf.mxu1 }
 0x12f   :  { %v235_v33 = vadd.f32 %v454_v31, %v234_v32 }
 0x131   :  { %v238_v34 = vmax.f32 %v235_v33, 0.0 }
 0x133   :  { %v239_v35 = vpack.c.bf16 %v238_v34, %v238_v34 }
 0x135   :  { %316 = vmatmul.bf16.vlgmr.msra.gmra.mxu2 %v239_v35 }
 0x136   :  { %v236_v36 = vpop.f32.mrf.mxu1 }
 0x1b8   :  { %v317_v38 = vpop.f32.mrf.mxu2 }
 0x1b9   :  { %v318_v39 = vadd.f32 %v455_v37, %v317_v38 }
 0x1bb   :  { %321 = vst [vmem:[%s608_s7] sm:$0xff] %v318_v39 }
 0x1c0   :  { %v319_v40 = vpop.f32.mrf.mxu2 }
 0x1c1   :  { %326 = vsyncpa [#allocation3], 1 }
 0x1c2   :  { %327 = vsyncpa [#allocation5], 1 }

</bundles_post_ra>
